<compile_context>
chip_gen: v7x
topology: tpu7x:2x2x1
jax: 0.10.0
libtpu: 0.0.40
codegen_flags: <defaults>
</compile_context>

<pallas_src>
import jax
import jax.numpy as jnp
from jax.experimental import pallas as pl
from jax.experimental.pallas import tpu as pltpu
from jax.scipy.linalg import block_diag


def _make_kernel(M, Cy, Cp):
    inv_m = 1.0 / M

    def kernel(feats_ref, w1_ref, b1_ref, wh_ref, bh_ref, out_ref):
        feats = feats_ref[...]                                        # [bb, D]

        # Layer 1 for all M members in one MXU pass.
        # Columns m*H:(m+1)*H of h are member m's hidden activations.
        h = jnp.dot(feats, w1_ref[...], preferred_element_type=jnp.float32)
        h = jnp.maximum(h + b1_ref[...], 0.0)                         # [bb, M*H]

        # Fused head matmul:
        #   o[:, :Cy]                      = sum_m (h_m @ Wy_m + by_m)   (row-stacked Wy)
        #   o[:, Cy+m*Cp : Cy+(m+1)*Cp]    = h_m @ Wp_m + bp_m           (block-diag Wp)
        o = jnp.dot(h, wh_ref[...], preferred_element_type=jnp.float32) + bh_ref[...]

        y_mean = o[:, :Cy] * inv_m                                    # mean_m y_m

        # Per-member sigmoid (numerically stable), then mean over members.
        z = o[:, Cy:]                                                 # [bb, M*Cp]
        ez = jnp.exp(-jnp.abs(z))
        p_all = jnp.where(z >= 0, 1.0 / (1.0 + ez), ez / (1.0 + ez))
        p_sum = p_all[:, 0:Cp]
        for m in range(1, M):                                         # static unroll, M tiny
            p_sum = p_sum + p_all[:, m * Cp:(m + 1) * Cp]

        out_ref[...] = jnp.concatenate([y_mean, p_sum * inv_m], axis=-1)

    return kernel


def ensemble_forward(x, x_raw, sess, params, *, batch_block=256):
    """params: W1 [M,D,H], b1 [M,1,H], Wy [M,H,Cy], by [M,1,Cy],
    Wp [M,H,Cp], bp [M,1,Cp].  Returns (y_mean [B,Cy], p_mean [B,Cp])."""
    feats = jnp.concatenate([x, x_raw, sess], axis=-1).astype(jnp.float32)
    B, D = feats.shape
    W1, b1 = params["W1"], params["b1"]
    Wy, by = params["Wy"], params["by"]
    Wp, bp = params["Wp"], params["bp"]
    M, _, H = W1.shape
    Cy = Wy.shape[-1]
    Cp = Wp.shape[-1]

    # ---- Host-side weight packing: members along the lane axis ----
    W1p = jnp.transpose(W1, (1, 0, 2)).reshape(D, M * H)          # [D, M*H]
    b1p = b1.reshape(1, M * H)                                    # [1, M*H]
    # Head: y-mean folded into row-stacked Wy; p kept per-member via block-diag Wp.
    Wh = jnp.concatenate([Wy.reshape(M * H, Cy),                  # [M*H, Cy]
                          block_diag(*Wp)], axis=1)               # [M*H, Cy + M*Cp]
    bh = jnp.concatenate([by.sum(axis=0),                         # [1, Cy]
                          bp.reshape(1, M * Cp)], axis=1)         # [1, Cy + M*Cp]

    # ---- Batch tiling: one grid step for small B, parallel batch grid otherwise ----
    bb = B if B <= batch_block else batch_block
    pad = (-B) % bb
    feats_p = jnp.pad(feats, ((0, pad), (0, 0))) if pad else feats
    Bp = B + pad

    out = pl.pallas_call(
        _make_kernel(M, Cy, Cp),
        out_shape=jax.ShapeDtypeStruct((Bp, Cy + Cp), jnp.float32),
        grid=(Bp // bb,),
        in_specs=[
            pl.BlockSpec((bb, D), lambda i: (i, 0)),               # feats (batch-tiled)
            pl.BlockSpec((D, M * H), lambda i: (0, 0)),            # packed W1
            pl.BlockSpec((1, M * H), lambda i: (0, 0)),            # packed b1
            pl.BlockSpec((M * H, Cy + M * Cp), lambda i: (0, 0)),  # fused head weight
            pl.BlockSpec((1, Cy + M * Cp), lambda i: (0, 0)),      # fused head bias
        ],
        out_specs=pl.BlockSpec((bb, Cy + Cp), lambda i: (i, 0)),   # single lane-dense slab
        compiler_params=pltpu.CompilerParams(
            dimension_semantics=("parallel",)),                    # batch axis -> v7x 2-TC
    )(feats_p, W1p, b1p, Wh, bh)

    out = out[:B]
    return out[:, :Cy], out[:, Cy:]


def _reference(x, x_raw, sess, params):
    feats = jnp.concatenate([x, x_raw, sess], axis=-1).astype(jnp.float32)
    ys, ps = [], []
    M = params["W1"].shape[0]
    for m in range(M):
        h = jnp.maximum(feats @ params["W1"][m] + params["b1"][m], 0.0)
        y = h @ params["Wy"][m] + params["by"][m]
        p = jax.nn.sigmoid(h @ params["Wp"][m] + params["bp"][m])
        ys.append(y)
        ps.append(p)
    return jnp.stack(ys, 0).mean(0), jnp.stack(ps, 0).mean(0)


if __name__ == "__main__":
    key = jax.random.PRNGKey(0)
    B = 8                   # batch
    Dx, Dr, Ds = 16, 8, 8   # x, x_raw, sess feature widths
    D = Dx + Dr + Ds        # 32 concatenated features
    H = 32                  # hidden
    Cy, Cp = 4, 4           # y / p head widths
    M = 3                   # ensemble size

    ks = jax.random.split(key, 10)
    x = jax.random.normal(ks[0], (B, Dx), jnp.float32)
    x_raw = jax.random.normal(ks[1], (B, Dr), jnp.float32)
    sess = jax.random.normal(ks[2], (B, Ds), jnp.float32)

    params = {
        "W1": jax.random.normal(ks[3], (M, D, H), jnp.float32) * 0.1,
        "b1": jax.random.normal(ks[4], (M, 1, H), jnp.float32) * 0.01,
        "Wy": jax.random.normal(ks[5], (M, H, Cy), jnp.float32) * 0.1,
        "by": jax.random.normal(ks[6], (M, 1, Cy), jnp.float32) * 0.01,
        "Wp": jax.random.normal(ks[7], (M, H, Cp), jnp.float32) * 0.1,
        "bp": jax.random.normal(ks[8], (M, 1, Cp), jnp.float32) * 0.01,
    }

    y_mean, p_mean = jax.block_until_ready(ensemble_forward(x, x_raw, sess, params))
    y_ref, p_ref = _reference(x, x_raw, sess, params)

    assert y_mean.shape == (B, Cy) and p_mean.shape == (B, Cp)
    assert jnp.allclose(y_mean, y_ref, atol=1e-5, rtol=1e-4)
    assert jnp.allclose(p_mean, p_ref, atol=1e-5, rtol=1e-4)
    print("KERNEL_OK")
</pallas_src>

<mosaic_0001>
module attributes {stable_mosaic.version = 11 : i64} {
  func.func @kernel(%arg0: i32, %arg1: memref<8x32xf32, #tpu.memory_space<vmem>>, %arg2: memref<32x96xf32, #tpu.memory_space<vmem>>, %arg3: memref<1x96xf32, #tpu.memory_space<vmem>>, %arg4: memref<96x16xf32, #tpu.memory_space<vmem>>, %arg5: memref<1x16xf32, #tpu.memory_space<vmem>>, %arg6: memref<8x8xf32, #tpu.memory_space<vmem>>) attributes {dimension_semantics = [#tpu.dimension_semantics<parallel>], iteration_bounds = array<i64: 1>, scalar_prefetch = 0 : i64, scratch_operands = 0 : i64, tpu.core_type = #tpu.core_type<tc>, window_params = [{transform_indices = @transform_0, window_bounds = array<i64: 8, 32>}, {pipeline_mode = #tpu.pipeline_mode<synchronous>, transform_indices = @transform_1, window_bounds = array<i64: 32, 96>}, {pipeline_mode = #tpu.pipeline_mode<synchronous>, transform_indices = @transform_2, window_bounds = array<i64: 1, 96>}, {pipeline_mode = #tpu.pipeline_mode<synchronous>, transform_indices = @transform_3, window_bounds = array<i64: 96, 16>}, {pipeline_mode = #tpu.pipeline_mode<synchronous>, transform_indices = @transform_4, window_bounds = array<i64: 1, 16>}, {transform_indices = @transform_5, window_bounds = array<i64: 8, 8>}]} {
    %c0 = arith.constant 0 : index
    %c0_0 = arith.constant 0 : index
    %0 = vector.load %arg1[%c0, %c0_0] : memref<8x32xf32, #tpu.memory_space<vmem>>, vector<8x32xf32>
    %c0_1 = arith.constant 0 : index
    %c0_2 = arith.constant 0 : index
    %1 = vector.load %arg2[%c0_1, %c0_2] : memref<32x96xf32, #tpu.memory_space<vmem>>, vector<32x96xf32>
    %cst = arith.constant dense<0.000000e+00> : vector<8x96xf32>
    %2 = tpu.matmul %0, %1, %cst {dimension_numbers = #tpu.dot_dimension_numbers<[1], [0], [0], [1], [0, 0, 1, 1], [], []>} : vector<8x32xf32>, vector<32x96xf32>, vector<8x96xf32> -> vector<8x96xf32>
    %c0_3 = arith.constant 0 : index
    %c0_4 = arith.constant 0 : index
    %3 = vector.load %arg3[%c0_3, %c0_4] : memref<1x96xf32, #tpu.memory_space<vmem>>, vector<1x96xf32>
    %4 = vector.broadcast %3 : vector<1x96xf32> to vector<8x96xf32>
    %5 = arith.addf %2, %4 : vector<8x96xf32>
    %cst_5 = arith.constant 0.000000e+00 : f32
    %6 = vector.broadcast %cst_5 : f32 to vector<8x96xf32>
    %7 = arith.maximumf %5, %6 : vector<8x96xf32>
    %c0_6 = arith.constant 0 : index
    %c0_7 = arith.constant 0 : index
    %8 = vector.load %arg4[%c0_6, %c0_7] : memref<96x16xf32, #tpu.memory_space<vmem>>, vector<96x16xf32>
    %cst_8 = arith.constant dense<0.000000e+00> : vector<8x16xf32>
    %9 = tpu.matmul %7, %8, %cst_8 {dimension_numbers = #tpu.dot_dimension_numbers<[1], [0], [0], [1], [0, 0, 1, 1], [], []>} : vector<8x96xf32>, vector<96x16xf32>, vector<8x16xf32> -> vector<8x16xf32>
    %c0_9 = arith.constant 0 : index
    %c0_10 = arith.constant 0 : index
    %10 = vector.load %arg5[%c0_9, %c0_10] : memref<1x16xf32, #tpu.memory_space<vmem>>, vector<1x16xf32>
    %11 = vector.broadcast %10 : vector<1x16xf32> to vector<8x16xf32>
    %12 = arith.addf %9, %11 : vector<8x16xf32>
    %13 = vector.extract_strided_slice %12 {offsets = [0, 0], sizes = [8, 4], strides = [1, 1]} : vector<8x16xf32> to vector<8x4xf32>
    %cst_11 = arith.constant 0.333333343 : f32
    %14 = vector.broadcast %cst_11 : f32 to vector<8x4xf32>
    %15 = arith.mulf %13, %14 : vector<8x4xf32>
    %16 = vector.extract_strided_slice %12 {offsets = [0, 4], sizes = [8, 12], strides = [1, 1]} : vector<8x16xf32> to vector<8x12xf32>
    %17 = math.absf %16 : vector<8x12xf32>
    %cst_12 = arith.constant 0.000000e+00 : f32
    %18 = vector.broadcast %cst_12 : f32 to vector<8x12xf32>
    %19 = arith.subf %18, %17 : vector<8x12xf32>
    %20 = math.exp %19 : vector<8x12xf32>
    %cst_13 = arith.constant 0.000000e+00 : f32
    %21 = vector.broadcast %cst_13 : f32 to vector<8x12xf32>
    %22 = arith.cmpf oge, %16, %21 : vector<8x12xf32>
    %cst_14 = arith.constant 1.000000e+00 : f32
    %23 = vector.broadcast %cst_14 : f32 to vector<8x12xf32>
    %24 = arith.addf %23, %20 : vector<8x12xf32>
    %cst_15 = arith.constant 1.000000e+00 : f32
    %25 = vector.broadcast %cst_15 : f32 to vector<8x12xf32>
    %26 = arith.divf %25, %24 : vector<8x12xf32>
    %cst_16 = arith.constant 1.000000e+00 : f32
    %27 = vector.broadcast %cst_16 : f32 to vector<8x12xf32>
    %28 = arith.addf %27, %20 : vector<8x12xf32>
    %29 = arith.divf %20, %28 : vector<8x12xf32>
    %30 = arith.select %22, %26, %29 : vector<8x12xi1>, vector<8x12xf32>
    %31 = vector.extract_strided_slice %30 {offsets = [0, 0], sizes = [8, 4], strides = [1, 1]} : vector<8x12xf32> to vector<8x4xf32>
    %32 = vector.extract_strided_slice %30 {offsets = [0, 4], sizes = [8, 4], strides = [1, 1]} : vector<8x12xf32> to vector<8x4xf32>
    %33 = arith.addf %31, %32 : vector<8x4xf32>
    %34 = vector.extract_strided_slice %30 {offsets = [0, 8], sizes = [8, 4], strides = [1, 1]} : vector<8x12xf32> to vector<8x4xf32>
    %35 = arith.addf %33, %34 : vector<8x4xf32>
    %cst_17 = arith.constant 0.333333343 : f32
    %36 = vector.broadcast %cst_17 : f32 to vector<8x4xf32>
    %37 = arith.mulf %35, %36 : vector<8x4xf32>
    %38 = tpu.concatenate %15, %37 in 1 : vector<8x4xf32>, vector<8x4xf32> -> vector<8x8xf32>
    %c0_18 = arith.constant 0 : index
    %c0_19 = arith.constant 0 : index
    %39 = vector.load %arg6[%c0_18, %c0_19] : memref<8x8xf32, #tpu.memory_space<vmem>>, vector<8x8xf32>
    tpu.vector_store %arg6[%c0_18, %c0_19], %38 {strides = array<i32>} : memref<8x8xf32, #tpu.memory_space<vmem>>, vector<8x8xf32>,
    return
  }
  func.func @transform_0(%arg0: i32) -> (i32, i32) {
    %c0_i32 = arith.constant 0 : i32
    %c0_i32_0 = arith.constant 0 : i32
    return %arg0, %c0_i32 : i32, i32
  }
  func.func @transform_1(%arg0: i32) -> (i32, i32) {
    %c0_i32 = arith.constant 0 : i32
    %c0_i32_0 = arith.constant 0 : i32
    %c0_i32_1 = arith.constant 0 : i32
    return %c0_i32, %c0_i32_0 : i32, i32
  }
  func.func @transform_2(%arg0: i32) -> (i32, i32) {
    %c0_i32 = arith.constant 0 : i32
    %c0_i32_0 = arith.constant 0 : i32
    %c0_i32_1 = arith.constant 0 : i32
    return %c0_i32, %c0_i32_0 : i32, i32
  }
  func.func @transform_3(%arg0: i32) -> (i32, i32) {
    %c0_i32 = arith.constant 0 : i32
    %c0_i32_0 = arith.constant 0 : i32
    %c0_i32_1 = arith.constant 0 : i32
    return %c0_i32, %c0_i32_0 : i32, i32
  }
  func.func @transform_4(%arg0: i32) -> (i32, i32) {
    %c0_i32 = arith.constant 0 : i32
    %c0_i32_0 = arith.constant 0 : i32
    %c0_i32_1 = arith.constant 0 : i32
    return %c0_i32, %c0_i32_0 : i32, i32
  }
  func.func @transform_5(%arg0: i32) -> (i32, i32) {
    %c0_i32 = arith.constant 0 : i32
    %c0_i32_0 = arith.constant 0 : i32
    return %arg0, %c0_i32 : i32, i32
  }
}

</mosaic_0001>

<bundles_post_ra>
// kernel: tpu_custom_call.1
= control target key start
LH: loop header
LB: loop body
LE: loop exit
PB: predicated region body
PF: predicated region fallthrough
CT: control target
= control target key end

     0   :  { %v358_v3 = vmov 0.0|0.0   ;;  %vm359_vm0 = vmmov 0   ;;  %v360_v6 = vmov 0.0   ;;  %s463_s0 = inlined_call_operand.vmem [shape: f32[8,32], index: 0, kind: input, shape index: {}]   ;;  %s464_s1 = inlined_call_operand.vmem [shape: f32[32,96], index: 1, kind: input, shape index: {}]   ;;  %s465_s2 = inlined_call_operand.vmem [shape: f32[1,96], index: 2, kind: input, shape index: {}]   ;;  %s466_s3 = inlined_call_operand.vmem [shape: f32[96,16], index: 3, kind: input, shape index: {}]   ;;  %s467_s4 = inlined_call_operand.vmem [shape: f32[1,16], index: 4, kind: input, shape index: {}]   ;;  %s468_s5 = inlined_call_operand.hbm [shape: f32[8,8], index: 5, kind: output, shape index: {}]  }
   0x1   :  { %v22_v0 = vld [vmem:[%s464_s1] sm:$0xff]  ;;  %v23_v1 = vld [vmem:[%s464_s1 + $0x8] sm:$0xff]  ;;  %v24_v2 = vld [vmem:[%s464_s1 + $0x10] sm:$0xff]  ;;  %300 = vmatprep.subr.bf16.mxu0 %v358_v3  ;;  %270 = vmatprep.mubr.msk.f32.mxu0 %vm359_vm0, %v360_v6 }
   0x2   :  { %v301_v4 = vpack.c.bf16 %v23_v1, %v22_v0  ;;  %v25_v5 = vld [vmem:[%s464_s1 + $0x18] sm:$0xff]  ;;  %v108_v7 = vld [vmem:[%s466_s3] sm:$0xff]  ;;  %306 = vmatprep.subr.bf16.mxu1 %v358_v3  ;;  %v109_v8 = vld [vmem:[%s466_s3 + $0x8] sm:$0xff]  ;;  %297 = vmatprep.mubr.msk.f32.mxu1 %vm359_vm0, %v360_v6 }
   0x3   :  { %v110_v9 = vld [vmem:[%s466_s3 + $0x10] sm:$0xff]  ;;  %v111_v10 = vld [vmem:[%s466_s3 + $0x18] sm:$0xff]  ;;  %v304_v11 = vpack.c.bf16 %v25_v5, %v24_v2  ;;  %v307_v12 = vpack.c.bf16 %v109_v8, %v108_v7 }
   0x4   :  { %302 = vmatpush3.bf16.msra.mxu0 %v301_v4  ;;  %v310_v13 = vpack.c.bf16 %v111_v10, %v110_v9 }
   0x5   :  { %303 = vmatprep.subr.bf16.mxu0 %v358_v3  ;;  %308 = vmatpush3.bf16.msra.mxu1 %v307_v12 }
   0x6   :  { %10 = vsyncpa [#allocation3], 0  ;;  %309 = vmatprep.subr.bf16.mxu1 %v358_v3  ;;  %v112_v14 = vld [vmem:[%s466_s3 + $0x20] sm:$0xff]  ;;  %v113_v15 = vld [vmem:[%s466_s3 + $0x28] sm:$0xff]  ;;  %vm33_vm1 = vcmask 261120   ;;  %vm127_vm2 = vcmask 785408  }
   0x7   :  { %v21_v16 = vld [vmem:[%s463_s0] sm:$0xff]  ;;  %v313_v17 = vpack.c.bf16 %v113_v15, %v112_v14  ;;  %v114_v18 = vld [vmem:[%s466_s3 + $0x30] sm:$0xff]  ;;  %v115_v19 = vld [vmem:[%s466_s3 + $0x38] sm:$0xff]  ;;  %vm222_vm4 = vcmask 31744   ;;  %vm224_vm5 = vcmask 64512  }
   0x8   :  { %305 = vmatpush3.bf16.msra.mxu0 %v304_v11  ;;  %v316_v20 = vpack.c.bf16 %v115_v19, %v114_v18  ;;  %v116_v21 = vld [vmem:[%s466_s3 + $0x40] sm:$0xff]  ;;  %v117_v22 = vld [vmem:[%s466_s3 + $0x48] sm:$0xff]  ;;  %v118_v24 = vld [vmem:[%s466_s3 + $0x50] sm:$0xff] }
   0x9   :  { %311 = vmatpush3.bf16.msra.mxu1 %v310_v13  ;;  %v319_v23 = vpack.c.bf16 %v117_v22, %v116_v21  ;;  %v119_v25 = vld [vmem:[%s466_s3 + $0x58] sm:$0xff]  ;;  %v240_v27 = vld [vmem:[%s465_s2] ss:$0 sm:$0xff]  ;;  %s361_s2 = smov 124   ;;  %s362_s3 = smov 120  }
   0xa   :  { %312 = vmatprep.subr.bf16.mxu1 %v358_v3  ;;  %v322_v26 = vpack.c.bf16 %v119_v25, %v118_v24  ;;  %v242_v32 = vld [vmem:[%s467_s4] ss:$0 sm:$0xff]  ;;  %s363_s4 = smov [#allocation2]  }
   0xb   :  { %271 = vmatmul.mubr.msk.f32.vlgmr.msra.gmra.mrb[0].mxu0 %vm33_vm1, %v21_v16  ;;  %s232_s29 = sshll.u32 %s363_s4, 4  ;;  %s233_s29 = int_to_ptr.vmem [resolvable:$true] %s232_s29 }
   0xc   :  { %s334_s30 = scalar_lea.vmem %s233_s29, 128  ;;  %p339_p1 = scmp.lt.s32.totalorder %s233_s29, %s233_s29 }
   0xd   :  { %314 = vmatpush3.bf16.msra.mxu1 %v313_v17  ;;  %p335_p0 = scmp.ne.s32.totalorder %s233_s29, %s334_s30  ;;  %p340_p2 = scmp.lt.s32.totalorder %s334_s30, %s334_s30 }
   0xe   :  { %315 = vmatprep.subr.bf16.mxu1 %v358_v3 }
   0xf   :  { %p341_p3 = por %p340_p2, %p339_p1 }
  0x11   :  { %317 = vmatpush3.bf16.msra.mxu1 %v316_v20  ;;  %p342_p4 = pnand %p341_p3, %p335_p0 }
  0x12   :  { %318 = vmatprep.subr.bf16.mxu1 %v358_v3 }
  0x15   :  { %320 = vmatpush3.bf16.msra.mxu1 %v319_v23 }
  0x16   :  { %321 = vmatprep.subr.bf16.mxu1 %v358_v3 }
  0x19   :  { %323 = vmatpush3.bf16.msra.mxu1 %v322_v26 }
  0xde   :  { %v103_v28 = vpop.f32.mrb[0].mxu0 }
  0xdf   :  { %v104_v29 = vadd.f32 %v240_v27, %v103_v28  ;;  %v272_v30 = vpop.f32.mrb[1].mxu0 }
  0xe1   :  { %v107_v31 = vmax.f32 %v104_v29, 0.0 }
  0xe3   :  { %298 = vmatmul.mubr.msk.f32.vlgmr.msra.gmra.mrb[0].mxu1 %vm127_vm2, %v107_v31 }
 0x1b6   :  { %v197_v33 = vpop.f32.mrb[0].mxu1 }
 0x1b7   :  { %v198_v34 = vadd.f32 %v242_v32, %v197_v33  ;;  %v299_v35 = vpop.f32.mrb[1].mxu1 }
 0x1b9   :  { %v202_v36 = vand.u32 2147483647, %v198_v34  ;;  %vm206_vm3 = vcmp.ge.f32.partialorder %v198_v34, 0.0  ;;  %v201_v48 = vmul.f32 0.33333334, %v198_v34 }
 0x1bb   :  { %v203_v37 = vsub.f32 0.0, %v202_v36 }
 0x1bd   :  { %v204_v38 = vmul.f32 1.442695, %v203_v37 }
 0x1bf   :  { %330 = vpow2.f32 %v204_v38 }
 0x1c9   :  { %v331_v39 = vpop.eup %330 }
 0x1ca   :  { %v207_v40 = vadd.f32 1.0, %v331_v39 }
 0x1cc   :  { %332 = vrcp.f32 %v207_v40 }
 0x1d6   :  { %v333_v41 = vpop.eup %332 }
 0x1d7   :  { %v210_v42 = vmul.f32 %v333_v41, %v331_v39 }
 0x1d9   :  { %v211_v43 = vsel %vm206_vm3, %v333_v41, %v210_v42 }
 0x1da   :  { %213 = vrot.lane.b32.xlu0 %v211_v43, %s361_s2 }
 0x1de   :  { %217 = vrot.lane.b32.xlu0 %v211_v43, %s362_s3 }
 0x24c   :  { %v214_v44 = vpop.permute.xlu0 %213 }
 0x24d   :  { %v216_v45 = vadd.f32 %v214_v44, %v211_v43 }
 0x250   :  { %v218_v46 = vpop.permute.xlu0 %217 }
 0x251   :  { %v220_v47 = vadd.f32 %v218_v46, %v216_v45 }
 0x253   :  { %v221_v49 = vmul.f32 0.33333334, %v220_v47 }
 0x255   :  { %v223_v50 = vsel %vm222_vm4, %v201_v48, %v221_v49 }
 0x256   :  { %225 = vst.msk [vmem:[#allocation2] sm:$0xff] %vm224_vm5, %v223_v50 }
 0x257   :  { %345 = shalt.err (!%p342_p4)
}
 0x258   :  { %s346_s8 = scalar_lea.hbm %s468_s5, 128 }
 0x259   :  { %p347_p5 = scmp.ne.s32.totalorder %s468_s5, %s346_s8  ;;  %p350_p6 = scmp.lt.u32.totalorder %s346_s8, %s468_s5 }
 0x25b   :  { %p352_p7 = pnand %p350_p6, %p347_p5 }
 0x25d   :  { %355 = shalt.err (!%p352_p7)
}
 0x25e   :  { %235 = dma.vmem_to_hbm [thread:$0]  %s233_s29, 128, %s468_s5, [#allocation3]  }
 0x25f   :  { %356 = dma.done.wait [#allocation3], 128  }
 0x260   :  { %357 = vsyncadd [#allocation3], 4294967168 }
 0x261   :  { %239 = vsyncpa [#allocation3], 1 }

</bundles_post_ra>
